<compile_context>
chip_gen: v5e
topology: v5e:2x2
jax: 0.10.0
libtpu: 0.0.40
codegen_flags: <defaults>
</compile_context>

<pallas_src>
import jax
import jax.numpy as jnp
from jax.experimental import pallas as pl
from jax.experimental.pallas import tpu as pltpu

HIDDEN_SIZE = 32   # paf_config.HIDDEN_SIZE
FF_SIZE     = 64   # paf_config.FF_SIZE
DROPOUT_R   = 0.1  # paf_config.DROPOUT_R (identity in eval mode)
# TODO(synk): training-mode dropout (pltpu.prng_* mask + 1/(1-p) scale) not implemented;
#             forward uses eval semantics only.

LANES = 128


def _round_up(x, m):
    return ((x + m - 1) // m) * m


def _lane_geometry(h):
    """Return (h_pad, pack) such that pack * h_pad is a multiple of 128 lanes."""
    if h >= LANES:
        return _round_up(h, LANES), 1
    hp = 1
    while hp < h:               # divisors of 128 are powers of two
        hp *= 2
    return hp, LANES // hp


# ---------------------------------------------------------------------------
# Kernel
# ---------------------------------------------------------------------------
def ffn_kernel(x_ref, w1_ref, b1_ref, w2_ref, b2_ref, o_ref):
    # x_ref:  (tm, pack*Hp)       packed token rows (streamed)
    # w1_ref: (pack*Hp, pack*FFp) block-diagonal Linear1 weights (resident)
    # b1_ref: (1, pack*FFp)       tiled bias, f32 (resident)
    # w2_ref: (pack*FFp, pack*Hp) block-diagonal Linear2 weights (resident)
    # b2_ref: (1, pack*Hp)        tiled bias, f32 (resident)
    x = x_ref[...]
    h = jnp.dot(x, w1_ref[...], preferred_element_type=jnp.float32)
    h = jnp.maximum(h + b1_ref[...], 0.0)            # bias + ReLU in f32
    # dropout: identity (eval mode)
    y = jnp.dot(h.astype(w2_ref.dtype), w2_ref[...],
                preferred_element_type=jnp.float32) + b2_ref[...]
    o_ref[...] = y.astype(o_ref.dtype)


# ---------------------------------------------------------------------------
# One-time parameter packing (hoisted out of the per-call hot path)
# ---------------------------------------------------------------------------
def pack_ffn_params(w1, b1, w2, b2, *, dtype=jnp.float32):
    """w1:(FF,H), b1:(FF,), w2:(H,FF), b2:(H,)  (PyTorch nn.Linear layouts).

    Returns (w1_blk, b1_blk, w2_blk, b2_blk), geom.  `dtype` is the streaming
    dtype for the weights (match x; bf16 recommended)."""
    FF, H = w1.shape
    assert w2.shape == (H, FF) and b1.shape == (FF,) and b2.shape == (H,)

    Hp, pack = _lane_geometry(H)
    FFp = _round_up(FF, LANES // pack)          # pack*FFp is a multiple of 128
    LP, FP = pack * Hp, pack * FFp

    # Zero-pad to lane-friendly widths (no-op for H=32 / FF=64).
    w1f = jnp.zeros((FFp, Hp), jnp.float32).at[:FF, :H].set(w1.astype(jnp.float32))
    w2f = jnp.zeros((Hp, FFp), jnp.float32).at[:H, :FF].set(w2.astype(jnp.float32))
    b1f = jnp.zeros((FFp,), jnp.float32).at[:FF].set(b1.astype(jnp.float32))
    b2f = jnp.zeros((Hp,), jnp.float32).at[:H].set(b2.astype(jnp.float32))

    eye = jnp.eye(pack, dtype=jnp.float32)
    w1_blk = jnp.kron(eye, w1f.T).astype(dtype)          # (LP, FP)
    w2_blk = jnp.kron(eye, w2f.T).astype(dtype)          # (FP, LP)
    b1_blk = jnp.tile(b1f, pack).reshape(1, FP)          # f32
    b2_blk = jnp.tile(b2f, pack).reshape(1, LP)          # f32

    geom = dict(H=H, FF=FF, Hp=Hp, FFp=FFp, pack=pack, LP=LP, FP=FP)
    return (w1_blk, b1_blk, w2_blk, b2_blk), geom


def _resident_spec(shape):
    """Grid-resident operand: same block every step; single-buffered if supported."""
    try:
        return pl.BlockSpec(shape, lambda i: (0, 0), pipeline_mode=pl.Buffered(1))
    except TypeError:   # older jax without pipeline_mode kwarg
        return pl.BlockSpec(shape, lambda i: (0, 0))


# ---------------------------------------------------------------------------
# Forward
# ---------------------------------------------------------------------------
def ffn_forward(x, packed_params, geom, *, tm_max=1024):
    """x: (B, S, H).  Output has x.dtype; pass bf16 x (and bf16-packed params)
    for ~2x less HBM traffic — f32 accumulation happens inside the kernel."""
    B, S, H = x.shape
    assert H == geom["H"]
    w1_blk, b1_blk, w2_blk, b2_blk = packed_params
    pack, Hp, LP, FP = geom["pack"], geom["Hp"], geom["LP"], geom["FP"]
    dtype = x.dtype
    M = B * S

    # Pad tokens only to a multiple of `pack` and features to Hp (both usually
    # no-ops) — never up to a tile multiple; Pallas masks the ragged last block.
    m_tok = _round_up(M, pack)
    x2d = x.reshape(M, H)
    if Hp != H or m_tok != M:
        x2d = jnp.pad(x2d, ((0, m_tok - M), (0, Hp - H)))
    mp = m_tok // pack
    x_packed = x2d.reshape(mp, LP)

    # Row tile: aim for ~8 grid steps (pipelining + v7x megacore), >=256 packed
    # rows per step, multiple of 8 sublanes, never larger than the problem.
    tm = _round_up(pl.cdiv(mp, 8), 8)
    tm = max(tm, 256)
    tm = min(tm, tm_max, _round_up(mp, 8))
    grid = (pl.cdiv(mp, tm),)

    itemsize = jnp.dtype(dtype).itemsize
    w_itemsize = jnp.dtype(w1_blk.dtype).itemsize
    cost = pl.CostEstimate(
        flops=4 * mp * LP * FP,                                  # two block-diag matmuls
        transcendentals=0,
        bytes_accessed=2 * mp * LP * itemsize                    # x in + y out
                       + (w1_blk.size + w2_blk.size) * w_itemsize
                       + (b1_blk.size + b2_blk.size) * 4,
    )

    # VMEM budget: 2x double-buffered (tm,LP) tiles + single-buffered weights +
    # f32 (tm,FP)/(tm,LP) temporaries; 2x safety margin, capped for v7x (64 MiB/TC).
    vmem_bytes = (2 * (2 * tm * LP * itemsize)
                  + 2 * LP * FP * w_itemsize + (FP + LP) * 4
                  + tm * (FP + LP) * 4)
    vmem_limit = int(min(max(2 * vmem_bytes, 32 << 20), 48 << 20))

    out_packed = pl.pallas_call(
        ffn_kernel,
        out_shape=jax.ShapeDtypeStruct((mp, LP), dtype),
        grid_spec=pltpu.PrefetchScalarGridSpec(
            num_scalar_prefetch=0,
            grid=grid,
            in_specs=[
                pl.BlockSpec((tm, LP), lambda i: (i, 0)),   # packed x rows (streamed)
                _resident_spec((LP, FP)),                   # W1 block-diag
                _resident_spec((1, FP)),                    # b1 (f32)
                _resident_spec((FP, LP)),                   # W2 block-diag
                _resident_spec((1, LP)),                    # b2 (f32)
            ],
            out_specs=pl.BlockSpec((tm, LP), lambda i: (i, 0)),
        ),
        compiler_params=pltpu.CompilerParams(
            dimension_semantics=("parallel",),              # shards rows across v7x TCs
            vmem_limit_bytes=vmem_limit),
        cost_estimate=cost,
    )(x_packed, w1_blk, b1_blk, w2_blk, b2_blk)

    out2d = out_packed.reshape(m_tok, Hp)
    if Hp != H or m_tok != M:
        out2d = out2d[:M, :H]
    return out2d.reshape(B, S, H)


def init_params(key, hidden, ff, dtype=jnp.float32):
    """Deterministic synthetic init matching PyTorch nn.Linear param shapes."""
    k1, k2, k3, k4 = jax.random.split(key, 4)
    lim1 = 1.0 / (hidden ** 0.5)
    lim2 = 1.0 / (ff ** 0.5)
    w1 = jax.random.uniform(k1, (ff, hidden), dtype, -lim1, lim1)   # Linear(H -> FF).weight
    b1 = jax.random.uniform(k2, (ff,),        dtype, -lim1, lim1)
    w2 = jax.random.uniform(k3, (hidden, ff), dtype, -lim2, lim2)   # Linear(FF -> H).weight
    b2 = jax.random.uniform(k4, (hidden,),    dtype, -lim2, lim2)
    return w1, b1, w2, b2


if __name__ == "__main__":
    key = jax.random.PRNGKey(0)
    kx, kp = jax.random.split(key)

    B, S = 2, 8
    x = jax.random.normal(kx, (B, S, HIDDEN_SIZE), jnp.float32)
    w1, b1, w2, b2 = init_params(kp, HIDDEN_SIZE, FF_SIZE)

    ref = jnp.maximum(x @ w1.T + b1, 0.0) @ w2.T + b2

    # f32 path — weights packed once (outside the hot path); tight tolerance.
    params_f32, geom = pack_ffn_params(w1, b1, w2, b2, dtype=jnp.float32)
    out = jax.block_until_ready(ffn_forward(x, params_f32, geom))
    assert out.shape == (B, S, HIDDEN_SIZE)
    assert jnp.allclose(out, ref, atol=1e-5, rtol=1e-5)

    # bf16 streaming path (recommended: ~2x less HBM traffic; f32 accumulation
    # in-kernel).  ~1e-2-level error vs the f32 reference is expected.
    params_bf16, geom_bf16 = pack_ffn_params(w1, b1, w2, b2, dtype=jnp.bfloat16)
    out_bf16 = jax.block_until_ready(
        ffn_forward(x.astype(jnp.bfloat16), params_bf16, geom_bf16))
    assert out_bf16.dtype == jnp.bfloat16
    assert jnp.allclose(out_bf16.astype(jnp.float32), ref, atol=5e-2, rtol=5e-2)

    print("KERNEL_OK")
</pallas_src>

<mosaic_0001>
module attributes {stable_mosaic.version = 11 : i64} {
  func.func @ffn_kernel(%arg0: i32, %arg1: memref<8x128xf32, #tpu.memory_space<vmem>>, %arg2: memref<128x256xf32, #tpu.memory_space<vmem>>, %arg3: memref<1x256xf32, #tpu.memory_space<vmem>>, %arg4: memref<256x128xf32, #tpu.memory_space<vmem>>, %arg5: memref<1x128xf32, #tpu.memory_space<vmem>>, %arg6: memref<8x128xf32, #tpu.memory_space<vmem>>) attributes {dimension_semantics = [#tpu.dimension_semantics<parallel>], iteration_bounds = array<i64: 1>, scalar_prefetch = 0 : i64, scratch_operands = 0 : i64, tpu.core_type = #tpu.core_type<tc>, window_params = [{transform_indices = @transform_0, window_bounds = array<i64: 8, 128>}, {pipeline_mode = #tpu.pipeline_mode<synchronous>, transform_indices = @transform_1, window_bounds = array<i64: 128, 256>}, {pipeline_mode = #tpu.pipeline_mode<synchronous>, transform_indices = @transform_2, window_bounds = array<i64: 1, 256>}, {pipeline_mode = #tpu.pipeline_mode<synchronous>, transform_indices = @transform_3, window_bounds = array<i64: 256, 128>}, {pipeline_mode = #tpu.pipeline_mode<synchronous>, transform_indices = @transform_4, window_bounds = array<i64: 1, 128>}, {transform_indices = @transform_5, window_bounds = array<i64: 8, 128>}]} {
    %c0 = arith.constant 0 : index
    %c0_0 = arith.constant 0 : index
    %0 = vector.load %arg1[%c0, %c0_0] : memref<8x128xf32, #tpu.memory_space<vmem>>, vector<8x128xf32>
    %c0_1 = arith.constant 0 : index
    %c0_2 = arith.constant 0 : index
    %1 = vector.load %arg2[%c0_1, %c0_2] : memref<128x256xf32, #tpu.memory_space<vmem>>, vector<128x256xf32>
    %cst = arith.constant dense<0.000000e+00> : vector<8x256xf32>
    %2 = tpu.matmul %0, %1, %cst {dimension_numbers = #tpu.dot_dimension_numbers<[1], [0], [0], [1], [0, 0, 1, 1], [], []>} : vector<8x128xf32>, vector<128x256xf32>, vector<8x256xf32> -> vector<8x256xf32>
    %c0_3 = arith.constant 0 : index
    %c0_4 = arith.constant 0 : index
    %3 = vector.load %arg3[%c0_3, %c0_4] : memref<1x256xf32, #tpu.memory_space<vmem>>, vector<1x256xf32>
    %4 = vector.broadcast %3 : vector<1x256xf32> to vector<8x256xf32>
    %5 = arith.addf %2, %4 : vector<8x256xf32>
    %cst_5 = arith.constant 0.000000e+00 : f32
    %6 = vector.broadcast %cst_5 : f32 to vector<8x256xf32>
    %7 = arith.maximumf %5, %6 : vector<8x256xf32>
    %c0_6 = arith.constant 0 : index
    %c0_7 = arith.constant 0 : index
    %8 = vector.load %arg4[%c0_6, %c0_7] : memref<256x128xf32, #tpu.memory_space<vmem>>, vector<256x128xf32>
    %cst_8 = arith.constant dense<0.000000e+00> : vector<8x128xf32>
    %9 = tpu.matmul %7, %8, %cst_8 {dimension_numbers = #tpu.dot_dimension_numbers<[1], [0], [0], [1], [0, 0, 1, 1], [], []>} : vector<8x256xf32>, vector<256x128xf32>, vector<8x128xf32> -> vector<8x128xf32>
    %c0_9 = arith.constant 0 : index
    %c0_10 = arith.constant 0 : index
    %10 = vector.load %arg5[%c0_9, %c0_10] : memref<1x128xf32, #tpu.memory_space<vmem>>, vector<1x128xf32>
    %11 = vector.broadcast %10 : vector<1x128xf32> to vector<8x128xf32>
    %12 = arith.addf %9, %11 : vector<8x128xf32>
    %c0_11 = arith.constant 0 : index
    %c0_12 = arith.constant 0 : index
    %13 = vector.load %arg6[%c0_11, %c0_12] : memref<8x128xf32, #tpu.memory_space<vmem>>, vector<8x128xf32>
    tpu.vector_store %arg6[%c0_11, %c0_12], %12 {strides = array<i32>} : memref<8x128xf32, #tpu.memory_space<vmem>>, vector<8x128xf32>,
    return
  }
  func.func @transform_0(%arg0: i32) -> (i32, i32) {
    %c0_i32 = arith.constant 0 : i32
    %c0_i32_0 = arith.constant 0 : i32
    return %arg0, %c0_i32 : i32, i32
  }
  func.func @transform_1(%arg0: i32) -> (i32, i32) {
    %c0_i32 = arith.constant 0 : i32
    %c0_i32_0 = arith.constant 0 : i32
    %c0_i32_1 = arith.constant 0 : i32
    return %c0_i32, %c0_i32_0 : i32, i32
  }
  func.func @transform_2(%arg0: i32) -> (i32, i32) {
    %c0_i32 = arith.constant 0 : i32
    %c0_i32_0 = arith.constant 0 : i32
    %c0_i32_1 = arith.constant 0 : i32
    return %c0_i32, %c0_i32_0 : i32, i32
  }
  func.func @transform_3(%arg0: i32) -> (i32, i32) {
    %c0_i32 = arith.constant 0 : i32
    %c0_i32_0 = arith.constant 0 : i32
    %c0_i32_1 = arith.constant 0 : i32
    return %c0_i32, %c0_i32_0 : i32, i32
  }
  func.func @transform_4(%arg0: i32) -> (i32, i32) {
    %c0_i32 = arith.constant 0 : i32
    %c0_i32_0 = arith.constant 0 : i32
    %c0_i32_1 = arith.constant 0 : i32
    return %c0_i32, %c0_i32_0 : i32, i32
  }
  func.func @transform_5(%arg0: i32) -> (i32, i32) {
    %c0_i32 = arith.constant 0 : i32
    %c0_i32_0 = arith.constant 0 : i32
    return %arg0, %c0_i32 : i32, i32
  }
}

</mosaic_0001>

<bundles_post_ra>
// kernel: tpu_custom_call.1
= control target key start
LH: loop header
LB: loop body
LE: loop exit
PB: predicated region body
PF: predicated region fallthrough
CT: control target
= control target key end

     0   :  { %10 = vsyncpa [#allocation3], 0  ;;  %s466_s0 = inlined_call_operand.hbm [shape: f32[4,128], index: 0, kind: input, shape index: {}]   ;;  %s467_s1 = inlined_call_operand.hbm [shape: f32[128,256], index: 1, kind: input, shape index: {}]   ;;  %s468_s2 = inlined_call_operand.hbm [shape: f32[1,256], index: 2, kind: input, shape index: {}]   ;;  %s469_s3 = inlined_call_operand.hbm [shape: f32[256,128], index: 3, kind: input, shape index: {}]   ;;  %s470_s4 = inlined_call_operand.vmem [shape: f32[1,128], index: 4, kind: input, shape index: {}]   ;;  %s471_s5 = inlined_call_operand.hbm [shape: f32[4,128], index: 5, kind: output, shape index: {}]  }
   0x1   :  { %11 = vsyncpa [#allocation6], 0 }
   0x2   :  { %12 = vsyncpa [#allocation9], 0 }
   0x3   :  { %13 = vsyncpa [#allocation4], 0  ;;  %s31_s20 = sshll.u32 %s467_s1, 4  ;;  %s32_s20 = int_to_ptr.hbm [resolvable:$true] %s31_s20 }
   0x4   :  { %17 = vsyncadd [#allocation3], 64  ;;  %s401_s21 = smov [#allocation5]   ;;  %s18_s25 = sshll.u32 %s466_s0, 4  ;;  %s19_s25 = int_to_ptr.hbm [resolvable:$true] %s18_s25 }
   0x5   :  { %s33_s22 = sshll.u32 %s401_s21, 4  ;;  %s402_s26 = smov 256   ;;  %s34_s22 = int_to_ptr.vmem [resolvable:$true] %s33_s22 }
   0x6   :  { %s403_s27 = smov 16   ;;  %s404_s28 = smov [#allocation2]  }
   0x7   :  { %39 = dma.hbm_to_vmem [thread:$0]  %s32_s20, 4096, %s34_s22, [#allocation6], %s402_s26, %s402_s26, %s403_s27  }
   0x8   :  { %s20_s29 = sshll.u32 %s404_s28, 4  ;;  %s405_s30 = smov 64   ;;  %s21_s29 = int_to_ptr.vmem [resolvable:$true] %s20_s29 }
   0x9   :  { %s406_s6 = smov 4   ;;  %s45_s8 = sshll.u32 %s468_s2, 4  ;;  %s46_s8 = int_to_ptr.hbm [resolvable:$true] %s45_s8 }
   0xa   :  { %26 = dma.hbm_to_vmem [thread:$0]  %s19_s25, 64, %s21_s29, [#allocation3], %s405_s30, %s405_s30, %s406_s6  }
   0xb   :  { %s407_s9 = smov [#allocation7]   ;;  %s55_s12 = sshll.u32 %s469_s3, 4  ;;  %s56_s12 = int_to_ptr.hbm [resolvable:$true] %s55_s12 }
   0xc   :  { %s47_s0 = sshll.u32 %s407_s9, 4  ;;  %s408_s13 = smov [#allocation8]   ;;  %s48_s0 = int_to_ptr.vmem [resolvable:$true] %s47_s0 }
   0xd   :  { %50 = dma.hbm_to_vmem [thread:$0]  %s46_s8, 32, %s48_s0, [#allocation6]  }
   0xe   :  { %s57_s14 = sshll.u32 %s408_s13, 4  ;;  %s409_s15 = smov 128   ;;  %s58_s14 = int_to_ptr.vmem [resolvable:$true] %s57_s14 }
   0xf   :  { %s410_s16 = smov 8  }
  0x10   :  { %63 = dma.hbm_to_vmem [thread:$0]  %s56_s12, 4096, %s58_s14, [#allocation9], %s409_s15, %s409_s15, %s410_s16  }
  0x11   :  { %393 = dma.done.wait [#allocation3], 128  }
  0x12   :  { %394 = vsyncadd [#allocation3], 4294967168 }
  0x13   :  { %395 = dma.done.wait [#allocation6], 4128  }
  0x14   :  { %396 = vsyncadd [#allocation6], 4294963168 }
  0x15   :  { %397 = dma.done.wait [#allocation9], 4096  }
  0x16   :  { %398 = vsyncadd [#allocation9], 4294963200  ;;  %v113_v0 = vld [vmem:[#allocation5 + $0xf0] sm:$0xff]  ;;  %v111_v1 = vld [vmem:[#allocation5 + $0xe0] sm:$0xff] }
  0x17   :  { %v114_v2 = vld [vmem:[#allocation5 + $0xf8] sm:$0xff]  ;;  %121 = vmatpush.msra.mxu0 %v113_v0  ;;  %v112_v3 = vld [vmem:[#allocation5 + $0xe8] sm:$0xff]  ;;  %v109_v4 = vld [vmem:[#allocation5 + $0xd0] sm:$0xff] }
  0x18   :  { %141 = vmatpush.msra.mxu1 %v114_v2  ;;  %v110_v5 = vld [vmem:[#allocation5 + $0xd8] sm:$0xff]  ;;  %v107_v6 = vld [vmem:[#allocation5 + $0xc0] sm:$0xff]  ;;  %v108_v7 = vld [vmem:[#allocation5 + $0xc8] sm:$0xff] }
  0x19   :  { %122 = vmatpush.msra.mxu0 %v111_v1  ;;  %v105_v8 = vld [vmem:[#allocation5 + $0xb0] sm:$0xff]  ;;  %v106_v9 = vld [vmem:[#allocation5 + $0xb8] sm:$0xff]  ;;  %v103_v10 = vld [vmem:[#allocation5 + $0xa0] sm:$0xff] }
  0x1a   :  { %142 = vmatpush.msra.mxu1 %v112_v3  ;;  %v104_v11 = vld [vmem:[#allocation5 + $0xa8] sm:$0xff]  ;;  %v101_v12 = vld [vmem:[#allocation5 + $0x90] sm:$0xff]  ;;  %v102_v13 = vld [vmem:[#allocation5 + $0x98] sm:$0xff] }
  0x1b   :  { %123 = vmatpush.msra.mxu0 %v109_v4  ;;  %v178_v14 = vld [vmem:[#allocation8 + $0x78] sm:$0xff]  ;;  %v177_v15 = vld [vmem:[#allocation8 + $0x70] sm:$0xff]  ;;  %v100_v18 = vld [vmem:[#allocation5 + $0x88] sm:$0xff] }
  0x1c   :  { %143 = vmatpush.msra.mxu1 %v110_v5  ;;  %v194_v16 = vld [vmem:[#allocation8 + $0xf8] sm:$0xff]  ;;  %199 = vmatpush.msra.mxu2 %v178_v14  ;;  %v193_v19 = vld [vmem:[#allocation8 + $0xf0] sm:$0xff]  ;;  %v176_v20 = vld [vmem:[#allocation8 + $0x68] sm:$0xff] }
  0x1d   :  { %124 = vmatpush.msra.mxu0 %v107_v6  ;;  %v99_v17 = vld [vmem:[#allocation5 + $0x80] sm:$0xff]  ;;  %219 = vmatpush.msra.mxu3 %v194_v16  ;;  %v192_v21 = vld [vmem:[#allocation8 + $0xe8] sm:$0xff]  ;;  %v98_v23 = vld [vmem:[#allocation5 + $0x78] sm:$0xff] }
  0x1e   :  { %144 = vmatpush.msra.mxu1 %v108_v7  ;;  %v97_v22 = vld [vmem:[#allocation5 + $0x70] sm:$0xff]  ;;  %200 = vmatpush.msra.mxu2 %v177_v15  ;;  %v175_v24 = vld [vmem:[#allocation8 + $0x60] sm:$0xff]  ;;  %v174_v28 = vld [vmem:[#allocation8 + $0x58] sm:$0xff] }
  0x1f   :  { %125 = vmatpush.msra.mxu0 %v105_v8  ;;  %220 = vmatpush.msra.mxu3 %v193_v19  ;;  %v191_v25 = vld [vmem:[#allocation8 + $0xe0] sm:$0xff]  ;;  %v190_v29 = vld [vmem:[#allocation8 + $0xd8] sm:$0xff]  ;;  %v93_v30 = vld [vmem:[#allocation5 + $0x50] sm:$0xff] }
  0x20   :  { %145 = vmatpush.msra.mxu1 %v106_v9  ;;  %v95_v26 = vld [vmem:[#allocation5 + $0x60] sm:$0xff]  ;;  %v96_v27 = vld [vmem:[#allocation5 + $0x68] sm:$0xff]  ;;  %201 = vmatpush.msra.mxu2 %v176_v20  ;;  %v94_v31 = vld [vmem:[#allocation5 + $0x58] sm:$0xff] }
  0x21   :  { %126 = vmatpush.msra.mxu0 %v103_v10  ;;  %221 = vmatpush.msra.mxu3 %v192_v21  ;;  %v173_v32 = vld [vmem:[#allocation8 + $0x50] sm:$0xff]  ;;  %v91_v34 = vld [vmem:[#allocation5 + $0x40] sm:$0xff]  ;;  %v92_v35 = vld [vmem:[#allocation5 + $0x48] sm:$0xff] }
  0x22   :  { %146 = vmatpush.msra.mxu1 %v104_v11  ;;  %202 = vmatpush.msra.mxu2 %v175_v24  ;;  %v189_v33 = vld [vmem:[#allocation8 + $0xd0] sm:$0xff]  ;;  %v172_v36 = vld [vmem:[#allocation8 + $0x48] sm:$0xff]  ;;  %v171_v40 = vld [vmem:[#allocation8 + $0x40] sm:$0xff] }
  0x23   :  { %127 = vmatpush.msra.mxu0 %v101_v12  ;;  %222 = vmatpush.msra.mxu3 %v191_v25  ;;  %v188_v37 = vld [vmem:[#allocation8 + $0xc8] sm:$0xff]  ;;  %v90_v39 = vld [vmem:[#allocation5 + $0x38] sm:$0xff]  ;;  %v187_v41 = vld [vmem:[#allocation8 + $0xc0] sm:$0xff] }
  0x24   :  { %147 = vmatpush.msra.mxu1 %v102_v13  ;;  %203 = vmatpush.msra.mxu2 %v174_v28  ;;  %v89_v38 = vld [vmem:[#allocation5 + $0x30] sm:$0xff]  ;;  %v87_v42 = vld [vmem:[#allocation5 + $0x20] sm:$0xff]  ;;  %v88_v43 = vld [vmem:[#allocation5 + $0x28] sm:$0xff] }
  0x25   :  { %128 = vmatpush.msra.mxu0 %v99_v17  ;;  %223 = vmatpush.msra.mxu3 %v190_v29  ;;  %v170_v44 = vld [vmem:[#allocation8 + $0x38] sm:$0xff]  ;;  %v85_v46 = vld [vmem:[#allocation5 + $0x10] sm:$0xff]  ;;  %v84_v51 = vld [vmem:[#allocation5 + $0x8] sm:$0xff] }
  0x26   :  { %148 = vmatpush.msra.mxu1 %v100_v18  ;;  %204 = vmatpush.msra.mxu2 %v173_v32  ;;  %v186_v45 = vld [vmem:[#allocation8 + $0xb8] sm:$0xff]  ;;  %v169_v48 = vld [vmem:[#allocation8 + $0x30] sm:$0xff]  ;;  %v168_v53 = vld [vmem:[#allocation8 + $0x28] sm:$0xff] }
  0x27   :  { %129 = vmatpush.msra.mxu0 %v97_v22  ;;  %224 = vmatpush.msra.mxu3 %v189_v33  ;;  %v86_v47 = vld [vmem:[#allocation5 + $0x18] sm:$0xff]  ;;  %v83_v50 = vld [vmem:[#allocation5] sm:$0xff]  ;;  %v184_v54 = vld [vmem:[#allocation8 + $0xa8] sm:$0xff] }
  0x28   :  { %149 = vmatpush.msra.mxu1 %v98_v23  ;;  %205 = vmatpush.msra.mxu2 %v172_v36  ;;  %v185_v49 = vld [vmem:[#allocation8 + $0xb0] sm:$0xff]  ;;  %v167_v55 = vld [vmem:[#allocation8 + $0x20] sm:$0xff]  ;;  %v166_v57 = vld [vmem:[#allocation8 + $0x18] sm:$0xff] }
  0x29   :  { %130 = vmatpush.msra.mxu0 %v95_v26  ;;  %225 = vmatpush.msra.mxu3 %v188_v37  ;;  %v82_v52 = vld [vmem:[#allocation2] sm:$0xff]  ;;  %v183_v56 = vld [vmem:[#allocation8 + $0xa0] sm:$0xff]  ;;  %v164_v60 = vld [vmem:[#allocation8 + $0x8] sm:$0xff] }
  0x2a   :  { %150 = vmatpush.msra.mxu1 %v96_v27  ;;  %206 = vmatpush.msra.mxu2 %v171_v40  ;;  %v165_v58 = vld [vmem:[#allocation8 + $0x10] sm:$0xff]  ;;  %v182_v59 = vld [vmem:[#allocation8 + $0x98] sm:$0xff]  ;;  %v163_v62 = vld [vmem:[#allocation8] sm:$0xff] }
  0x2b   :  { %131 = vmatpush.msra.mxu0 %v93_v30  ;;  %226 = vmatpush.msra.mxu3 %v187_v41  ;;  %v181_v61 = vld [vmem:[#allocation8 + $0x90] sm:$0xff]  ;;  %v180_v63 = vld [vmem:[#allocation8 + $0x88] sm:$0xff]  ;;  %v179_v0 = vld [vmem:[#allocation8 + $0x80] sm:$0xff] }
  0x2c   :  { %151 = vmatpush.msra.mxu1 %v94_v31  ;;  %207 = vmatpush.msra.mxu2 %v170_v44  ;;  %v115_v1 = vld [vmem:[#allocation7] sm:$0x3]  ;;  %v272_v10 = vld [vmem:[%s470_s4] ss:$0 sm:$0xff] }
  0x2d   :  { %132 = vmatpush.msra.mxu0 %v91_v34  ;;  %227 = vmatpush.msra.mxu3 %v186_v45  ;;  %v117_v2 = vperm.slane %v115_v1, 0  ;;  %v118_v3 = vperm.slane %v115_v1, 1 }
  0x2e   :  { %152 = vmatpush.msra.mxu1 %v92_v35  ;;  %208 = vmatpush.msra.mxu2 %v169_v48 }
  0x2f   :  { %133 = vmatpush.msra.mxu0 %v89_v38  ;;  %228 = vmatpush.msra.mxu3 %v185_v49 }
  0x30   :  { %153 = vmatpush.msra.mxu1 %v90_v39  ;;  %209 = vmatpush.msra.mxu2 %v168_v53 }
  0x31   :  { %134 = vmatpush.msra.mxu0 %v87_v42  ;;  %229 = vmatpush.msra.mxu3 %v184_v54 }
  0x32   :  { %154 = vmatpush.msra.mxu1 %v88_v43  ;;  %210 = vmatpush.msra.mxu2 %v167_v55 }
  0x33   :  { %135 = vmatpush.msra.mxu0 %v85_v46  ;;  %230 = vmatpush.msra.mxu3 %v183_v56 }
  0x34   :  { %155 = vmatpush.msra.mxu1 %v86_v47  ;;  %211 = vmatpush.msra.mxu2 %v166_v57 }
  0x35   :  { %136 = vmatpush.msra.mxu0 %v83_v50  ;;  %231 = vmatpush.msra.mxu3 %v182_v59 }
  0x36   :  { %156 = vmatpush.msra.mxu1 %v84_v51  ;;  %137 = vmatmul.f32.vlgmr.msra.gmra.mxu0 %v82_v52 }
  0x37   :  { %157 = vmatmul.f32.vlgmr.msra.gmra.mxu1 %v82_v52  ;;  %212 = vmatpush.msra.mxu2 %v165_v58 }
  0x38   :  { %232 = vmatpush.msra.mxu3 %v181_v61 }
  0x39   :  { %213 = vmatpush.msra.mxu2 %v164_v60 }
  0x3a   :  { %233 = vmatpush.msra.mxu3 %v180_v63 }
  0x3b   :  { %214 = vmatpush.msra.mxu2 %v163_v62 }
  0x3c   :  { %234 = vmatpush.msra.mxu3 %v179_v0 }
  0xb3   :  { %v138_v4 = vpop.f32.mrf.mxu0 }
  0xb4   :  { %v158_v5 = vpop.f32.mrf.mxu1  ;;  %v139_v6 = vadd.f32 %v138_v4, %v117_v2 }
  0xb5   :  { %v159_v7 = vadd.f32 %v158_v5, %v118_v3 }
  0xb6   :  { %v161_v8 = vmax.f32 %v139_v6, 0.0 }
  0xb7   :  { %v162_v9 = vmax.f32 %v159_v7, 0.0 }
  0xb8   :  { %215 = vmatmul.f32.vlgmr.msra.gmra.mxu2 %v161_v8 }
  0xb9   :  { %235 = vmatmul.f32.vlgmr.msra.gmra.mxu3 %v162_v9 }
 0x13b   :  { %v216_v11 = vpop.f32.mrf.mxu2 }
 0x13c   :  { %v236_v12 = vpop.f32.mrf.mxu3  ;;  %v217_v13 = vadd.f32 %v272_v10, %v216_v11 }
 0x13e   :  { %v237_v14 = vadd.f32 %v236_v12, %v217_v13 }
 0x140   :  { %239 = vst [vmem:[#allocation10] sm:$0xff] %v237_v14 }
 0x141   :  { %243 = vsyncadd [#allocation4], 64  ;;  %s246_s19 = sshll.u32 %s471_s5, 4  ;;  %s411_s20 = smov [#allocation10]   ;;  %s247_s19 = int_to_ptr.hbm [resolvable:$true] %s246_s19 }
 0x142   :  { %s244_s21 = sshll.u32 %s411_s20, 4  ;;  %s245_s21 = int_to_ptr.vmem [resolvable:$true] %s244_s21 }
 0x143   :  { %252 = dma.vmem_to_hbm [thread:$0]  %s245_s21, 64, %s247_s19, [#allocation4], %s405_s30, %s405_s30, %s406_s6  }
 0x144   :  { %399 = dma.done.wait [#allocation4], 128  }
 0x145   :  { %400 = vsyncadd [#allocation4], 4294967168 }
 0x146   :  { %257 = vsyncpa [#allocation3], 1 }
 0x147   :  { %258 = vsyncpa [#allocation6], 1 }
 0x148   :  { %259 = vsyncpa [#allocation9], 1 }
 0x149   :  { %260 = vsyncpa [#allocation4], 1 }

</bundles_post_ra>
